<compile_context>
chip_gen: v7x
topology: tpu7x:2x2x1
jax: 0.10.0
libtpu: 0.0.40
codegen_flags: <defaults>
</compile_context>

<pallas_src>
from itertools import combinations

import jax
import jax.numpy as jnp
from jax.experimental import pallas as pl
from jax.experimental.pallas import tpu as pltpu


def _round_up(n: int, m: int) -> int:
    return -(-n // m) * m


def _vmem_capacity_bytes() -> int:
    """Per-core VMEM capacity; conservative fallback if the query is unavailable."""
    try:
        return int(pltpu.get_tpu_info().vmem_capacity_bytes)
    except Exception:
        return 64 * 2**20  # v7x per-TC size; safe lower bound for v5e/v6e too


def _tile_footprint_bytes(tb: int, f_e: int, p_e: int,
                          x_itemsize: int, w_itemsize: int) -> int:
    two_pe = 2 * p_e
    return (f_e * two_pe * w_itemsize        # resident BigW
            + 2 * tb * f_e * x_itemsize      # double-buffered x tile
            + 2 * tb * p_e * x_itemsize      # double-buffered out tile
            + tb * two_pe * 4                # f32 matmul-result scratch
            + tb * p_e * 4)                  # epilogue temporaries (approx)


def _pick_batch_tile(batch: int, f_e: int, p_e: int,
                     x_itemsize: int, w_itemsize: int, vmem_budget: int):
    """Pick TB first (largest multiple of 8 <= 512 fitting the budget), then pad
    the batch up to a multiple of TB.  Prefer >= 2 tiles so the 'parallel' batch
    axis can shard across both v7x TensorCores."""
    tb = 8
    for cand in range(512, 7, -8):
        if _tile_footprint_bytes(cand, f_e, p_e, x_itemsize, w_itemsize) <= vmem_budget:
            tb = cand
            break
    tb = min(tb, _round_up(batch, 8))          # don't pad tiny batches to huge tiles
    b_pad = _round_up(batch, tb)
    n_tiles = b_pad // tb
    if n_tiles == 1 and tb >= 16 and tb % 16 == 0:
        tb //= 2
        b_pad = _round_up(batch, tb)
        n_tiles = b_pad // tb
    return tb, b_pad, n_tiles


def _make_bilinear_kernel(pairs, emb: int):
    """Kernel specialized (at trace time) for a static list of field pairs."""

    def kernel(x_ref, w_ref, o_ref, l_ref):
        # One fused, lane-dense MXU call: (TB, F*E) @ (F*E, 2*P*E).
        # Result is parked in VMEM scratch so vreg pressure stays low.
        l_ref[...] = jnp.dot(x_ref[...], w_ref[...],
                             preferred_element_type=jnp.float32)
        for p, (i, j) in enumerate(pairs):                      # static unroll
            xi = x_ref[:, i * emb:(i + 1) * emb].astype(jnp.float32)
            xj = x_ref[:, j * emb:(j + 1) * emb].astype(jnp.float32)
            li = l_ref[:, (2 * p) * emb:(2 * p + 1) * emb]      # 0.5 * xi @ W_p^T
            lj = l_ref[:, (2 * p + 1) * emb:(2 * p + 2) * emb]  # 0.5 * xj @ W_p^T
            # Direct slab store; 0.5 already folded into the weights.
            o_ref[:, p * emb:(p + 1) * emb] = (li * xj + xi * lj).astype(o_ref.dtype)

    return kernel


def bilinear_sym_interaction(x, weights):
    """
    x        : (batch, num_fields, emb)   -- PyTorch input convention
    weights  : (num_pairs, emb, emb)      -- one nn.Linear weight per field pair,
                                             stored PyTorch-style (out, in)
    returns  : (batch, num_pairs, emb)
    """
    B, F, E = x.shape
    pairs = tuple(combinations(range(F), 2))
    P = len(pairs)
    assert P >= 1, "need at least two fields"
    assert weights.shape == (P, E, E)

    # Free reshape to a lane-dense 2-D layout.
    x_flat = x.reshape(B, F * E)

    # Block-structured fused weight (built once in the wrapper, traced through
    # XLA -- it only touches weights, not activations).  0.5 is folded in.
    w_dtype = x.dtype
    bigw = jnp.zeros((F * E, 2 * P * E), dtype=w_dtype)
    for p, (i, j) in enumerate(pairs):
        wt_half = (0.5 * weights[p].T).astype(w_dtype)           # (E, E)
        bigw = bigw.at[i * E:(i + 1) * E, (2 * p) * E:(2 * p + 1) * E].set(wt_half)
        bigw = bigw.at[j * E:(j + 1) * E, (2 * p + 1) * E:(2 * p + 2) * E].set(wt_half)

    x_itemsize = jnp.dtype(x.dtype).itemsize
    w_itemsize = jnp.dtype(w_dtype).itemsize

    cap = _vmem_capacity_bytes()
    TB, B_pad, n_tiles = _pick_batch_tile(B, F * E, P * E, x_itemsize, w_itemsize,
                                          vmem_budget=cap // 2)
    if B_pad != B:
        x_flat = jnp.pad(x_flat, ((0, B_pad - B), (0, 0)))

    # vmem_limit: >= real footprint with headroom, capped by physical capacity.
    need = _tile_footprint_bytes(TB, F * E, P * E, x_itemsize, w_itemsize)
    vmem_limit = max(int(1.5 * need), 16 * 2**20)
    vmem_limit = min(vmem_limit, min(int(0.85 * cap), 100 * 2**20))
    vmem_limit = max(vmem_limit, need)

    flops = 2 * B_pad * (F * E) * (2 * P * E) + 3 * B_pad * P * E
    bytes_accessed = (B_pad * F * E * x_itemsize          # x read
                      + B_pad * P * E * x_itemsize        # out write
                      + F * E * 2 * P * E * w_itemsize)   # weights

    kernel = _make_bilinear_kernel(pairs, E)

    out_flat = pl.pallas_call(
        kernel,
        out_shape=jax.ShapeDtypeStruct((B_pad, P * E), x.dtype),
        grid=(n_tiles,),
        in_specs=[
            # x tile: read once per batch tile
            pl.BlockSpec((TB, F * E), lambda b: (b, 0)),
            # fused BigW, VMEM-resident across the batch grid axis
            pl.BlockSpec((F * E, 2 * P * E), lambda b: (0, 0)),
        ],
        # lane-dense output slab; reshaped (free) to (B, P, E) below
        out_specs=pl.BlockSpec((TB, P * E), lambda b: (b, 0)),
        scratch_shapes=[pltpu.VMEM((TB, 2 * P * E), jnp.float32)],
        compiler_params=pltpu.CompilerParams(
            dimension_semantics=("parallel",),
            vmem_limit_bytes=int(vmem_limit),
        ),
        cost_estimate=pl.CostEstimate(flops=flops, transcendentals=0,
                                      bytes_accessed=bytes_accessed),
    )(x_flat, bigw)

    return out_flat[:B].reshape(B, P, E)


def _reference(x, weights):
    """Pure-JAX reference matching the PyTorch module semantics."""
    B, F, E = x.shape
    pairs = list(combinations(range(F), 2))
    outs = []
    for p, (i, j) in enumerate(pairs):
        vi = x[:, i, :]
        vj = x[:, j, :]
        w = weights[p]
        li = vi @ w.T
        lj = vj @ w.T
        outs.append(0.5 * (li * vj + vi * lj))
    return jnp.stack(outs, axis=1)


if __name__ == "__main__":
    # Small shapes consistent with the module: batch=2, num_fields=4, embedding=32
    B, F, E = 2, 4, 32
    P = F * (F - 1) // 2

    key = jax.random.PRNGKey(0)
    kx, kw = jax.random.split(key)
    x = jax.random.normal(kx, (B, F, E), dtype=jnp.float32)
    # Deterministic nn.Linear-style init: uniform(-1/sqrt(E), 1/sqrt(E)), one per pair
    bound = 1.0 / (E ** 0.5)
    weights = jax.random.uniform(kw, (P, E, E), dtype=jnp.float32,
                                 minval=-bound, maxval=bound)

    out = bilinear_sym_interaction(x, weights)
    out = jax.block_until_ready(out)

    ref = _reference(x, weights)
    assert out.shape == (B, P, E)
    assert jnp.allclose(out, ref, atol=1e-5, rtol=1e-4)

    print("KERNEL_OK")
</pallas_src>

<mosaic_0001>
module attributes {stable_mosaic.version = 11 : i64} {
  func.func @kernel(%arg0: i32, %arg1: memref<8x128xf32, #tpu.memory_space<vmem>>, %arg2: memref<128x384xf32, #tpu.memory_space<vmem>>, %arg3: memref<8x192xf32, #tpu.memory_space<vmem>>, %arg4: memref<8x384xf32, #tpu.memory_space<vmem>>) attributes {dimension_semantics = [#tpu.dimension_semantics<parallel>], iteration_bounds = array<i64: 1>, scalar_prefetch = 0 : i64, scratch_operands = 1 : i64, tpu.core_type = #tpu.core_type<tc>, window_params = [{transform_indices = @transform_0, window_bounds = array<i64: 8, 128>}, {pipeline_mode = #tpu.pipeline_mode<synchronous>, transform_indices = @transform_1, window_bounds = array<i64: 128, 384>}, {transform_indices = @transform_2, window_bounds = array<i64: 8, 192>}]} {
    %c0 = arith.constant 0 : index
    %c0_0 = arith.constant 0 : index
    %0 = vector.load %arg1[%c0, %c0_0] : memref<8x128xf32, #tpu.memory_space<vmem>>, vector<8x128xf32>
    %c0_1 = arith.constant 0 : index
    %c0_2 = arith.constant 0 : index
    %1 = vector.load %arg2[%c0_1, %c0_2] : memref<128x384xf32, #tpu.memory_space<vmem>>, vector<128x384xf32>
    %cst = arith.constant dense<0.000000e+00> : vector<8x384xf32>
    %2 = tpu.matmul %0, %1, %cst {dimension_numbers = #tpu.dot_dimension_numbers<[1], [0], [0], [1], [0, 0, 1, 1], [], []>} : vector<8x128xf32>, vector<128x384xf32>, vector<8x384xf32> -> vector<8x384xf32>
    %c0_3 = arith.constant 0 : index
    %c0_4 = arith.constant 0 : index
    %3 = vector.load %arg4[%c0_3, %c0_4] : memref<8x384xf32, #tpu.memory_space<vmem>>, vector<8x384xf32>
    tpu.vector_store %arg4[%c0_3, %c0_4], %2 {strides = array<i32>} : memref<8x384xf32, #tpu.memory_space<vmem>>, vector<8x384xf32>,
    %c0_5 = arith.constant 0 : index
    %c0_6 = arith.constant 0 : index
    %4 = vector.load %arg1[%c0_5, %c0_6] : memref<8x128xf32, #tpu.memory_space<vmem>>, vector<8x32xf32>
    %c0_7 = arith.constant 0 : index
    %c32 = arith.constant 32 : index
    %5 = vector.load %arg1[%c0_7, %c32] : memref<8x128xf32, #tpu.memory_space<vmem>>, vector<8x32xf32>
    %c0_8 = arith.constant 0 : index
    %c0_9 = arith.constant 0 : index
    %6 = vector.load %arg4[%c0_8, %c0_9] : memref<8x384xf32, #tpu.memory_space<vmem>>, vector<8x32xf32>
    %c0_10 = arith.constant 0 : index
    %c32_11 = arith.constant 32 : index
    %7 = vector.load %arg4[%c0_10, %c32_11] : memref<8x384xf32, #tpu.memory_space<vmem>>, vector<8x32xf32>
    %8 = arith.mulf %6, %5 : vector<8x32xf32>
    %9 = arith.mulf %4, %7 : vector<8x32xf32>
    %10 = arith.addf %8, %9 : vector<8x32xf32>
    %c0_12 = arith.constant 0 : index
    %c0_13 = arith.constant 0 : index
    %11 = vector.load %arg3[%c0_12, %c0_13] : memref<8x192xf32, #tpu.memory_space<vmem>>, vector<8x32xf32>
    tpu.vector_store %arg3[%c0_12, %c0_13], %10 {strides = array<i32>} : memref<8x192xf32, #tpu.memory_space<vmem>>, vector<8x32xf32>,
    %c0_14 = arith.constant 0 : index
    %c0_15 = arith.constant 0 : index
    %12 = vector.load %arg1[%c0_14, %c0_15] : memref<8x128xf32, #tpu.memory_space<vmem>>, vector<8x32xf32>
    %c0_16 = arith.constant 0 : index
    %c64 = arith.constant 64 : index
    %13 = vector.load %arg1[%c0_16, %c64] : memref<8x128xf32, #tpu.memory_space<vmem>>, vector<8x32xf32>
    %c0_17 = arith.constant 0 : index
    %c64_18 = arith.constant 64 : index
    %14 = vector.load %arg4[%c0_17, %c64_18] : memref<8x384xf32, #tpu.memory_space<vmem>>, vector<8x32xf32>
    %c0_19 = arith.constant 0 : index
    %c96 = arith.constant 96 : index
    %15 = vector.load %arg4[%c0_19, %c96] : memref<8x384xf32, #tpu.memory_space<vmem>>, vector<8x32xf32>
    %16 = arith.mulf %14, %13 : vector<8x32xf32>
    %17 = arith.mulf %12, %15 : vector<8x32xf32>
    %18 = arith.addf %16, %17 : vector<8x32xf32>
    %c0_20 = arith.constant 0 : index
    %c32_21 = arith.constant 32 : index
    %19 = vector.load %arg3[%c0_20, %c32_21] : memref<8x192xf32, #tpu.memory_space<vmem>>, vector<8x32xf32>
    tpu.vector_store %arg3[%c0_20, %c32_21], %18 {strides = array<i32>} : memref<8x192xf32, #tpu.memory_space<vmem>>, vector<8x32xf32>,
    %c0_22 = arith.constant 0 : index
    %c0_23 = arith.constant 0 : index
    %20 = vector.load %arg1[%c0_22, %c0_23] : memref<8x128xf32, #tpu.memory_space<vmem>>, vector<8x32xf32>
    %c0_24 = arith.constant 0 : index
    %c96_25 = arith.constant 96 : index
    %21 = vector.load %arg1[%c0_24, %c96_25] : memref<8x128xf32, #tpu.memory_space<vmem>>, vector<8x32xf32>
    %c0_26 = arith.constant 0 : index
    %c128 = arith.constant 128 : index
    %22 = vector.load %arg4[%c0_26, %c128] : memref<8x384xf32, #tpu.memory_space<vmem>>, vector<8x32xf32>
    %c0_27 = arith.constant 0 : index
    %c160 = arith.constant 160 : index
    %23 = vector.load %arg4[%c0_27, %c160] : memref<8x384xf32, #tpu.memory_space<vmem>>, vector<8x32xf32>
    %24 = arith.mulf %22, %21 : vector<8x32xf32>
    %25 = arith.mulf %20, %23 : vector<8x32xf32>
    %26 = arith.addf %24, %25 : vector<8x32xf32>
    %c0_28 = arith.constant 0 : index
    %c64_29 = arith.constant 64 : index
    %27 = vector.load %arg3[%c0_28, %c64_29] : memref<8x192xf32, #tpu.memory_space<vmem>>, vector<8x32xf32>
    tpu.vector_store %arg3[%c0_28, %c64_29], %26 {strides = array<i32>} : memref<8x192xf32, #tpu.memory_space<vmem>>, vector<8x32xf32>,
    %c0_30 = arith.constant 0 : index
    %c32_31 = arith.constant 32 : index
    %28 = vector.load %arg1[%c0_30, %c32_31] : memref<8x128xf32, #tpu.memory_space<vmem>>, vector<8x32xf32>
    %c0_32 = arith.constant 0 : index
    %c64_33 = arith.constant 64 : index
    %29 = vector.load %arg1[%c0_32, %c64_33] : memref<8x128xf32, #tpu.memory_space<vmem>>, vector<8x32xf32>
    %c0_34 = arith.constant 0 : index
    %c192 = arith.constant 192 : index
    %30 = vector.load %arg4[%c0_34, %c192] : memref<8x384xf32, #tpu.memory_space<vmem>>, vector<8x32xf32>
    %c0_35 = arith.constant 0 : index
    %c224 = arith.constant 224 : index
    %31 = vector.load %arg4[%c0_35, %c224] : memref<8x384xf32, #tpu.memory_space<vmem>>, vector<8x32xf32>
    %32 = arith.mulf %30, %29 : vector<8x32xf32>
    %33 = arith.mulf %28, %31 : vector<8x32xf32>
    %34 = arith.addf %32, %33 : vector<8x32xf32>
    %c0_36 = arith.constant 0 : index
    %c96_37 = arith.constant 96 : index
    %35 = vector.load %arg3[%c0_36, %c96_37] : memref<8x192xf32, #tpu.memory_space<vmem>>, vector<8x32xf32>
    tpu.vector_store %arg3[%c0_36, %c96_37], %34 {strides = array<i32>} : memref<8x192xf32, #tpu.memory_space<vmem>>, vector<8x32xf32>,
    %c0_38 = arith.constant 0 : index
    %c32_39 = arith.constant 32 : index
    %36 = vector.load %arg1[%c0_38, %c32_39] : memref<8x128xf32, #tpu.memory_space<vmem>>, vector<8x32xf32>
    %c0_40 = arith.constant 0 : index
    %c96_41 = arith.constant 96 : index
    %37 = vector.load %arg1[%c0_40, %c96_41] : memref<8x128xf32, #tpu.memory_space<vmem>>, vector<8x32xf32>
    %c0_42 = arith.constant 0 : index
    %c256 = arith.constant 256 : index
    %38 = vector.load %arg4[%c0_42, %c256] : memref<8x384xf32, #tpu.memory_space<vmem>>, vector<8x32xf32>
    %c0_43 = arith.constant 0 : index
    %c288 = arith.constant 288 : index
    %39 = vector.load %arg4[%c0_43, %c288] : memref<8x384xf32, #tpu.memory_space<vmem>>, vector<8x32xf32>
    %40 = arith.mulf %38, %37 : vector<8x32xf32>
    %41 = arith.mulf %36, %39 : vector<8x32xf32>
    %42 = arith.addf %40, %41 : vector<8x32xf32>
    %c0_44 = arith.constant 0 : index
    %c128_45 = arith.constant 128 : index
    %43 = vector.load %arg3[%c0_44, %c128_45] : memref<8x192xf32, #tpu.memory_space<vmem>>, vector<8x32xf32>
    tpu.vector_store %arg3[%c0_44, %c128_45], %42 {strides = array<i32>} : memref<8x192xf32, #tpu.memory_space<vmem>>, vector<8x32xf32>,
    %c0_46 = arith.constant 0 : index
    %c64_47 = arith.constant 64 : index
    %44 = vector.load %arg1[%c0_46, %c64_47] : memref<8x128xf32, #tpu.memory_space<vmem>>, vector<8x32xf32>
    %c0_48 = arith.constant 0 : index
    %c96_49 = arith.constant 96 : index
    %45 = vector.load %arg1[%c0_48, %c96_49] : memref<8x128xf32, #tpu.memory_space<vmem>>, vector<8x32xf32>
    %c0_50 = arith.constant 0 : index
    %c320 = arith.constant 320 : index
    %46 = vector.load %arg4[%c0_50, %c320] : memref<8x384xf32, #tpu.memory_space<vmem>>, vector<8x32xf32>
    %c0_51 = arith.constant 0 : index
    %c352 = arith.constant 352 : index
    %47 = vector.load %arg4[%c0_51, %c352] : memref<8x384xf32, #tpu.memory_space<vmem>>, vector<8x32xf32>
    %48 = arith.mulf %46, %45 : vector<8x32xf32>
    %49 = arith.mulf %44, %47 : vector<8x32xf32>
    %50 = arith.addf %48, %49 : vector<8x32xf32>
    %c0_52 = arith.constant 0 : index
    %c160_53 = arith.constant 160 : index
    %51 = vector.load %arg3[%c0_52, %c160_53] : memref<8x192xf32, #tpu.memory_space<vmem>>, vector<8x32xf32>
    tpu.vector_store %arg3[%c0_52, %c160_53], %50 {strides = array<i32>} : memref<8x192xf32, #tpu.memory_space<vmem>>, vector<8x32xf32>,
    return
  }
  func.func @transform_0(%arg0: i32) -> (i32, i32) {
    %c0_i32 = arith.constant 0 : i32
    %c0_i32_0 = arith.constant 0 : i32
    return %arg0, %c0_i32 : i32, i32
  }
  func.func @transform_1(%arg0: i32) -> (i32, i32) {
    %c0_i32 = arith.constant 0 : i32
    %c0_i32_0 = arith.constant 0 : i32
    %c0_i32_1 = arith.constant 0 : i32
    return %c0_i32, %c0_i32_0 : i32, i32
  }
  func.func @transform_2(%arg0: i32) -> (i32, i32) {
    %c0_i32 = arith.constant 0 : i32
    %c0_i32_0 = arith.constant 0 : i32
    return %arg0, %c0_i32 : i32, i32
  }
}

</mosaic_0001>

<bundles_post_ra>
// kernel: tpu_custom_call.1
= control target key start
LH: loop header
LB: loop body
LE: loop exit
PB: predicated region body
PF: predicated region fallthrough
CT: control target
= control target key end

     0   :  { %7 = vsyncpa [#allocation4], 0  ;;  %s648_s0 = inlined_call_operand.hbm [shape: f32[8,128], index: 0, kind: input, shape index: {}]   ;;  %s649_s1 = inlined_call_operand.hbm [shape: f32[128,384], index: 1, kind: input, shape index: {}]   ;;  %s650_s2 = inlined_call_operand.hbm [shape: f32[8,192], index: 2, kind: output, shape index: {}]  }
   0x1   :  { %8 = vsyncpa [#allocation7], 0 }
   0x2   :  { %9 = vsyncpa [#allocation5], 0  ;;  %s542_s9 = smov [#allocation3]   ;;  %s543_s11 = smov [#allocation6]  }
   0x3   :  { %s16_s10 = sshll.u32 %s542_s9, 4  ;;  %s25_s12 = sshll.u32 %s543_s11, 4  ;;  %s17_s10 = int_to_ptr.vmem [resolvable:$true] %s16_s10  ;;  %s568_s12 = int_to_ptr.vmem [resolvable:$true] %s25_s12 }
   0x4   :  { %s470_s15 = scalar_lea.hbm %s648_s0, 128 }
   0x5   :  { %p471_p0 = scmp.ne.s32.totalorder %s648_s0, %s470_s15  ;;  %p474_p1 = scmp.lt.u32.totalorder %s470_s15, %s648_s0 }
   0x7   :  { %p476_p2 = pnand %p474_p1, %p471_p0 }
   0x9   :  { %479 = shalt.err (!%p476_p2)
}
   0xa   :  { %s480_s20 = scalar_lea.vmem %s17_s10, 128  ;;  %p485_p4 = scmp.lt.s32.totalorder %s17_s10, %s17_s10 }
   0xb   :  { %p481_p3 = scmp.ne.s32.totalorder %s17_s10, %s480_s20  ;;  %p486_p5 = scmp.lt.s32.totalorder %s480_s20, %s480_s20 }
   0xd   :  { %p487_p6 = por %p486_p5, %p485_p4 }
   0xf   :  { %p488_p7 = pnand %p487_p6, %p481_p3 }
  0x11   :  { %491 = shalt.err (!%p488_p7)
}
  0x12   :  { %19 = dma.hbm_to_vmem [thread:$0]  %s648_s0, 128, %s17_s10, [#allocation4]  }
  0x13   :  { %s492_s25 = scalar_lea.hbm %s649_s1, 6144 }
  0x14   :  { %p493_p8 = scmp.ne.s32.totalorder %s649_s1, %s492_s25  ;;  %p496_p9 = scmp.lt.u32.totalorder %s492_s25, %s649_s1 }
  0x16   :  { %p498_p10 = pnand %p496_p9, %p493_p8 }
  0x18   :  { %501 = shalt.err (!%p498_p10)
}
  0x19   :  { %s502_s30 = scalar_lea.vmem %s568_s12, 6144  ;;  %p507_p12 = scmp.lt.s32.totalorder %s568_s12, %s568_s12 }
  0x1a   :  { %p503_p11 = scmp.ne.s32.totalorder %s568_s12, %s502_s30  ;;  %p508_p13 = scmp.lt.s32.totalorder %s502_s30, %s502_s30 }
  0x1c   :  { %p509_p0 = por %p508_p13, %p507_p12 }
  0x1e   :  { %p510_p1 = pnand %p509_p0, %p503_p11 }
  0x20   :  { %513 = shalt.err (!%p510_p1)
}
  0x21   :  { %s544_s0 = smov 384   ;;  %s545_s3 = smov 24  }
  0x22   :  { %31 = dma.hbm_to_vmem [thread:$0]  %s649_s1, 6144, %s568_s12, [#allocation7], %s544_s0, %s544_s0, %s545_s3  }
  0x23   :  { %536 = dma.done.wait [#allocation4], 128  }
  0x24   :  { %537 = vsyncadd [#allocation4], 4294967168 }
  0x25   :  { %538 = dma.done.wait [#allocation7], 6144  }
  0x26   :  { %539 = vsyncadd [#allocation7], 4294961152  ;;  %v546_v0 = vmov 0.0   ;;  %v547_v1 = vmov 0.0|0.0   ;;  %vm548_vm0 = vmmov 0   ;;  %v40_v2 = vld [vmem:[#allocation6 + $0x8] sm:$0xff] }
  0x27   :  { %151 = vmatprep.mubr.f32.mxu0 %v546_v0  ;;  %435 = vmatprep.subr.bf16.mxu1 %v547_v1  ;;  %v43_v3 = vld [vmem:[#allocation6 + $0x20] sm:$0xff]  ;;  %v42_v6 = vld [vmem:[#allocation6 + $0x18] sm:$0xff]  ;;  %v49_v8 = vld [vmem:[#allocation6 + $0x50] sm:$0xff]  ;;  %s549_s1 = smov 32   ;;  %s550_s6 = smov 96   ;;  %vm244_vm1 = vcmask 261120  }
  0x28   :  { %400 = vmatprep.mubr.msk.f32.mxu1 %vm548_vm0, %v546_v0  ;;  %v39_v4 = vld [vmem:[#allocation6] sm:$0xff]  ;;  %v403_v5 = vpack.c.bf16 %v43_v3, %v40_v2  ;;  %v46_v7 = vld [vmem:[#allocation6 + $0x38] sm:$0xff]  ;;  %v45_v11 = vld [vmem:[#allocation6 + $0x30] sm:$0xff]  ;;  %s551_s7 = smov 64   ;;  %vm263_vm2 = vcmask 523520   ;;  %vm282_vm3 = vcmask 785920  }
  0x29   :  { %v405_v9 = vpack.c.bf16 %v42_v6, %v39_v4  ;;  %v407_v10 = vpack.c.bf16 %v49_v8, %v46_v7  ;;  %v48_v12 = vld [vmem:[#allocation6 + $0x48] sm:$0xff]  ;;  %v55_v14 = vld [vmem:[#allocation6 + $0x80] sm:$0xff]  ;;  %v54_v18 = vld [vmem:[#allocation6 + $0x78] sm:$0xff]  ;;  %vm301_vm4 = vcmask 1048320   ;;  %s552_s8 = smov [#allocation8]  }
  0x2a   :  { %v52_v13 = vld [vmem:[#allocation6 + $0x68] sm:$0xff]  ;;  %404 = vmatprep.subr.bf16.mxu0 %v403_v5  ;;  %v409_v15 = vpack.c.bf16 %v48_v12, %v45_v11  ;;  %v51_v17 = vld [vmem:[#allocation6 + $0x60] sm:$0xff]  ;;  %v58_v19 = vld [vmem:[#allocation6 + $0x98] sm:$0xff]  ;;  %s341_s9 = sshll.u32 %s552_s8, 4  ;;  %s342_s9 = int_to_ptr.vmem [resolvable:$true] %s341_s9 }
  0x2b   :  { %406 = vmatpush1.bf16.msra.mxu0 %v405_v9  ;;  %v411_v16 = vpack.c.bf16 %v55_v14, %v52_v13  ;;  %v61_v20 = vld [vmem:[#allocation6 + $0xb0] sm:$0xff]  ;;  %v413_v21 = vpack.c.bf16 %v54_v18, %v51_v17  ;;  %v60_v24 = vld [vmem:[#allocation6 + $0xa8] sm:$0xff]  ;;  %v67_v26 = vld [vmem:[#allocation6 + $0xe0] sm:$0xff]  ;;  %s514_s10 = scalar_lea.vmem %s342_s9, 256  ;;  %p519_p3 = scmp.lt.s32.totalorder %s342_s9, %s342_s9 }
  0x2c   :  { %408 = vmatprep.subr.bf16.mxu0 %v407_v10  ;;  %v415_v22 = vpack.c.bf16 %v61_v20, %v58_v19  ;;  %v57_v23 = vld [vmem:[#allocation6 + $0x90] sm:$0xff]  ;;  %v64_v25 = vld [vmem:[#allocation6 + $0xc8] sm:$0xff]  ;;  %v600_v27 = vld [vmem:[#allocation3] sm:$0xff]  ;;  %p515_p2 = scmp.ne.s32.totalorder %s342_s9, %s514_s10  ;;  %p520_p4 = scmp.lt.s32.totalorder %s514_s10, %s514_s10 }
  0x2d   :  { %v41_v28 = vld [vmem:[#allocation6 + $0x10] sm:$0xff]  ;;  %v44_v29 = vld [vmem:[#allocation6 + $0x28] sm:$0xff]  ;;  %v47_v30 = vld [vmem:[#allocation6 + $0x40] sm:$0xff]  ;;  %268 = vrot.lane.b32.xlu1 %v600_v27, %s549_s1  ;;  %v417_v31 = vpack.c.bf16 %v60_v24, %v57_v23  ;;  %v419_v34 = vpack.c.bf16 %v67_v26, %v64_v25 }
  0x2e   :  { %v436_v32 = vpack.c.bf16 %v44_v29, %v41_v28  ;;  %v50_v33 = vld [vmem:[#allocation6 + $0x58] sm:$0xff]  ;;  %v63_v35 = vld [vmem:[#allocation6 + $0xc0] sm:$0xff]  ;;  %v73_v38 = vld [vmem:[#allocation6 + $0x110] sm:$0xff]  ;;  %p521_p5 = por %p520_p4, %p519_p3 }
  0x2f   :  { %410 = vmatpush1.bf16.msra.mxu0 %v409_v15  ;;  %v66_v36 = vld [vmem:[#allocation6 + $0xd8] sm:$0xff]  ;;  %v439_v39 = vpack.c.bf16 %v50_v33, %v47_v30  ;;  %v53_v40 = vld [vmem:[#allocation6 + $0x70] sm:$0xff]  ;;  %v56_v41 = vld [vmem:[#allocation6 + $0x88] sm:$0xff] }
  0x30   :  { %412 = vmatprep.subr.bf16.mxu0 %v411_v16  ;;  %v70_v37 = vld [vmem:[#allocation6 + $0xf8] sm:$0xff]  ;;  %437 = vmatpush3.bf16.msra.mxu1 %v436_v32  ;;  %v421_v42 = vpack.c.bf16 %v66_v36, %v63_v35  ;;  %v69_v44 = vld [vmem:[#allocation6 + $0xf0] sm:$0xff]  ;;  %v72_v45 = vld [vmem:[#allocation6 + $0x108] sm:$0xff]  ;;  %v442_v48 = vpack.c.bf16 %v56_v41, %v53_v40  ;;  %p522_p6 = pnand %p521_p5, %p515_p2 }
  0x31   :  { %438 = vmatprep.subr.bf16.mxu1 %v547_v1  ;;  %320 = vrot.lane.b32.xlu1 %v600_v27, %s550_s6  ;;  %v423_v43 = vpack.c.bf16 %v73_v38, %v70_v37  ;;  %v76_v46 = vld [vmem:[#allocation6 + $0x128] sm:$0xff]  ;;  %v79_v47 = vld [vmem:[#allocation6 + $0x140] sm:$0xff]  ;;  %v62_v50 = vld [vmem:[#allocation6 + $0xb8] sm:$0xff]  ;;  %v425_v51 = vpack.c.bf16 %v72_v45, %v69_v44 }
  0x32   :  { %v59_v49 = vld [vmem:[#allocation6 + $0xa0] sm:$0xff]  ;;  %v427_v52 = vpack.c.bf16 %v79_v47, %v76_v46  ;;  %v78_v54 = vld [vmem:[#allocation6 + $0x138] sm:$0xff]  ;;  %v85_v56 = vld [vmem:[#allocation6 + $0x170] sm:$0xff] }
  0x33   :  { %414 = vmatpush1.bf16.msra.mxu0 %v413_v21  ;;  %v75_v53 = vld [vmem:[#allocation6 + $0x120] sm:$0xff]  ;;  %v82_v55 = vld [vmem:[#allocation6 + $0x158] sm:$0xff]  ;;  %v445_v57 = vpack.c.bf16 %v62_v50, %v59_v49  ;;  %v65_v58 = vld [vmem:[#allocation6 + $0xd0] sm:$0xff] }
  0x34   :  { %416 = vmatprep.subr.bf16.mxu0 %v415_v22  ;;  %440 = vmatpush3.bf16.msra.mxu1 %v439_v39  ;;  %v68_v59 = vld [vmem:[#allocation6 + $0xe8] sm:$0xff]  ;;  %v429_v60 = vpack.c.bf16 %v78_v54, %v75_v53  ;;  %v431_v61 = vpack.c.bf16 %v85_v56, %v82_v55  ;;  %v81_v62 = vld [vmem:[#allocation6 + $0x150] sm:$0xff]  ;;  %v71_v2 = vld [vmem:[#allocation6 + $0x100] sm:$0xff] }
  0x35   :  { %441 = vmatprep.subr.bf16.mxu1 %v547_v1  ;;  %v84_v63 = vld [vmem:[#allocation6 + $0x168] sm:$0xff]  ;;  %v448_v0 = vpack.c.bf16 %v68_v59, %v65_v58  ;;  %v74_v3 = vld [vmem:[#allocation6 + $0x118] sm:$0xff]  ;;  %v77_v6 = vld [vmem:[#allocation6 + $0x130] sm:$0xff] }
  0x36   :  { %v433_v4 = vpack.c.bf16 %v84_v63, %v81_v62  ;;  %v451_v5 = vpack.c.bf16 %v74_v3, %v71_v2  ;;  %v80_v7 = vld [vmem:[#allocation6 + $0x148] sm:$0xff]  ;;  %v83_v9 = vld [vmem:[#allocation6 + $0x160] sm:$0xff]  ;;  %v86_v10 = vld [vmem:[#allocation6 + $0x178] sm:$0xff] }
  0x37   :  { %418 = vmatpush1.bf16.msra.mxu0 %v417_v31  ;;  %v454_v8 = vpack.c.bf16 %v80_v7, %v77_v6  ;;  %v457_v11 = vpack.c.bf16 %v86_v10, %v83_v9 }
  0x38   :  { %420 = vmatprep.subr.bf16.mxu0 %v419_v34  ;;  %443 = vmatpush3.bf16.msra.mxu1 %v442_v48 }
  0x39   :  { %444 = vmatprep.subr.bf16.mxu1 %v547_v1 }
  0x3b   :  { %422 = vmatpush1.bf16.msra.mxu0 %v421_v42 }
  0x3c   :  { %424 = vmatprep.subr.bf16.mxu0 %v423_v43  ;;  %446 = vmatpush3.bf16.msra.mxu1 %v445_v57 }
  0x3d   :  { %447 = vmatprep.subr.bf16.mxu1 %v547_v1 }
  0x3f   :  { %426 = vmatpush1.bf16.msra.mxu0 %v425_v51 }
  0x40   :  { %428 = vmatprep.subr.bf16.mxu0 %v427_v52  ;;  %449 = vmatpush3.bf16.msra.mxu1 %v448_v0 }
  0x41   :  { %450 = vmatprep.subr.bf16.mxu1 %v547_v1 }
  0x43   :  { %430 = vmatpush1.bf16.msra.mxu0 %v429_v60 }
  0x44   :  { %432 = vmatprep.subr.bf16.mxu0 %v431_v61  ;;  %452 = vmatpush3.bf16.msra.mxu1 %v451_v5 }
  0x45   :  { %453 = vmatprep.subr.bf16.mxu1 %v547_v1 }
  0x47   :  { %434 = vmatpush1.bf16.msra.mxu0 %v433_v4 }
  0x48   :  { %455 = vmatpush3.bf16.msra.mxu1 %v454_v8 }
  0x49   :  { %456 = vmatprep.subr.bf16.mxu1 %v547_v1 }
  0x4a   :  { %152 = vmatmul.mubr.f32.vlgmr.msra.gmra.mrb[0].mxu0 %v600_v27 }
  0x4c   :  { %458 = vmatpush3.bf16.msra.mxu1 %v457_v11 }
  0x4f   :  { %401 = vmatmul.mubr.f32.vlgmr.msra.gmra.mrb[0].mxu1 %v600_v27 }
  0x9f   :  { %v269_v16 = vpop.permute.xlu1 %268 }
  0xa3   :  { %v321_v19 = vpop.permute.xlu1 %320 }
 0x11d   :  { %v153_v12 = vpop.f32.mrb[0].mxu0 }
 0x11e   :  { %250 = vrot.lane.b32.xlu0 %v153_v12, %s549_s1  ;;  %v155_v13 = vpop.f32.mrb[1].mxu0  ;;  %v248_v26 = vmul.f32 %v153_v12, %v600_v27 }
 0x11f   :  { %273 = vrot.lane.b32.xlu1 %v155_v13, %s550_s6  ;;  %v271_v24 = vmul.f32 %v269_v16, %v155_v13  ;;  %v286_v30 = vmul.f32 %v155_v13, %v600_v27 }
 0x122   :  { %288 = vrot.lane.b32.xlu0 %v155_v13, %s551_s7  ;;  %v224_v14 = vpop.f32.mrb[0].mxu1 }
 0x123   :  { %v402_v15 = vpop.f32.mrb[1].mxu1  ;;  %v310_v23 = vmul.f32 %v224_v14, %v600_v27  ;;  %v323_v34 = vmul.f32 %v321_v19, %v224_v14 }
 0x190   :  { %v251_v17 = vpop.permute.xlu0 %250 }
 0x191   :  { %v253_v18 = vmul.f32 %v251_v17, %v600_v27  ;;  %v274_v21 = vpop.permute.xlu1 %273 }
 0x192   :  { %v276_v22 = vmul.f32 %v274_v21, %v600_v27 }
 0x193   :  { %255 = vrot.lane.b32.xlu0 %v253_v18, %s551_s7 }
 0x194   :  { %v289_v1 = vpop.permute.xlu0 %288  ;;  %v277_v25 = vadd.f32 %v276_v22, %v271_v24 }
 0x195   :  { %v291_v20 = vmul.f32 %v289_v1, %v600_v27 }
 0x197   :  { %325 = vrot.lane.b32.xlu0 %v224_v14, %s550_s6  ;;  %293 = vrot.lane.b32.xlu1 %v291_v20, %s549_s1 }
 0x19b   :  { %234 = vrot.lane.b32.xlu0 %v600_v27, %s550_s6  ;;  %239 = vrot.lane.b32.xlu1 %v153_v12, %s550_s6 }
 0x19f   :  { %306 = vrot.lane.b32.xlu0 %v600_v27, %s549_s1  ;;  %312 = vrot.lane.b32.xlu1 %v310_v23, %s550_s6 }
 0x1a3   :  { %279 = vrot.lane.b32.xlu1 %v277_v25, %s551_s7 }
 0x205   :  { %v256_v28 = vpop.permute.xlu0 %255 }
 0x206   :  { %v258_v29 = vadd.f32 %v256_v28, %v248_v26 }
 0x208   :  { %260 = vrot.lane.b32.xlu0 %v258_v29, %s550_s6 }
 0x209   :  { %v294_v31 = vpop.permute.xlu1 %293  ;;  %v326_v32 = vpop.permute.xlu0 %325 }
 0x20a   :  { %v296_v33 = vadd.f32 %v294_v31, %v286_v30  ;;  %v328_v35 = vmul.f32 %v326_v32, %v600_v27 }
 0x20c   :  { %v329_v36 = vadd.f32 %v328_v35, %v323_v34  ;;  %298 = vrot.lane.b32.xlu0 %v296_v33, %s549_s1 }
 0x20d   :  { %v240_v37 = vpop.permute.xlu1 %239  ;;  %v235_v38 = vpop.permute.xlu0 %234 }
 0x20e   :  { %v242_v39 = vmul.f32 %v240_v37, %v600_v27  ;;  %v237_v40 = vmul.f32 %v235_v38, %v153_v12  ;;  %331 = vrot.lane.b32.xlu1 %v329_v36, %s550_s6 }
 0x210   :  { %v243_v41 = vadd.f32 %v242_v39, %v237_v40 }
 0x211   :  { %v307_v42 = vpop.permute.xlu0 %306  ;;  %v313_v44 = vpop.permute.xlu1 %312 }
 0x212   :  { %245 = vst.msk [vmem:[#allocation8] sm:$0xff] %vm244_vm1, %v243_v41  ;;  %v309_v43 = vmul.f32 %v307_v42, %v224_v14 }
 0x214   :  { %v315_v45 = vadd.f32 %v313_v44, %v309_v43 }
 0x215   :  { %v280_v47 = vpop.permute.xlu1 %279 }
 0x216   :  { %316 = vst.msk [vmem:[#allocation8 + $0x8] sm:$0xff] %vm244_vm1, %v315_v45 }
 0x27a   :  { %v261_v46 = vpop.permute.xlu0 %260 }
 0x27b   :  { %264 = vst.msk [vmem:[#allocation8] sm:$0xff] %vm263_vm2, %v261_v46 }
 0x27c   :  { %283 = vst.msk [vmem:[#allocation8] sm:$0xff] %vm282_vm3, %v280_v47 }
 0x27e   :  { %v299_v27 = vpop.permute.xlu0 %298 }
 0x27f   :  { %302 = vst.msk [vmem:[#allocation8] sm:$0xff] %vm301_vm4, %v299_v27 }
 0x280   :  { %v332_v48 = vpop.permute.xlu1 %331 }
 0x281   :  { %334 = vst.msk [vmem:[#allocation8 + $0x8] sm:$0xff] %vm263_vm2, %v332_v48 }
 0x282   :  { %525 = shalt.err (!%p522_p6)
}
 0x283   :  { %s526_s13 = scalar_lea.hbm %s650_s2, 256 }
 0x284   :  { %p527_p7 = scmp.ne.s32.totalorder %s650_s2, %s526_s13  ;;  %p530_p8 = scmp.lt.u32.totalorder %s526_s13, %s650_s2 }
 0x286   :  { %p532_p9 = pnand %p530_p8, %p527_p7 }
 0x288   :  { %535 = shalt.err (!%p532_p9)
}
 0x289   :  { %344 = dma.vmem_to_hbm [thread:$0]  %s342_s9, 256, %s650_s2, [#allocation5]  }
 0x28a   :  { %540 = dma.done.wait [#allocation5], 256  }
 0x28b   :  { %541 = vsyncadd [#allocation5], 4294967040 }
 0x28c   :  { %348 = vsyncpa [#allocation4], 1 }
 0x28d   :  { %349 = vsyncpa [#allocation7], 1 }
 0x28e   :  { %350 = vsyncpa [#allocation5], 1 }

</bundles_post_ra>
